<compile_context>
chip_gen: v5e
topology: v5e:2x2
jax: 0.10.0
libtpu: 0.0.40
codegen_flags: <defaults>
</compile_context>

<pallas_src>
import functools
import math

import jax
import jax.numpy as jnp
import numpy as np
from jax.experimental import pallas as pl
from jax.experimental.pallas import tpu as pltpu


def _round_up(v, m):
    return ((v + m - 1) // m) * m


def _hbnn_fused_kernel(prior_ref, x_ref, wmu_ref, wrho_ref, bias_ref,
                       nw_ref, nb_ref, y_ref, kl_ref,
                       *, layer_dims, feat_pad, compute_kl):
    """Whole-network forward (+ optional KL) in one kernel.

    prior_ref : SMEM (4L,)        f32  per layer [pmu, 0.5*plv, 0.5*exp(-plv), kl_prior]
    x_ref     : VMEM (Bp, P)      f32  zero-padded input
    wmu_ref   : VMEM (L, P, P)    f32  weight mu,  zero-padded
    wrho_ref  : VMEM (L, P, P)    f32  weight rho, padded with -20 (sigma ~ 0)
    bias_ref  : VMEM (ceil8(2L),P) f32 rows [bmu_0, brho_0, bmu_1, brho_1, ...]
    nw_ref    : VMEM (L, P, P)    f32  weight noise, zero-padded
    nb_ref    : VMEM (ceil8(L),P) f32  bias noise rows, zero-padded
    y_ref     : VMEM (Bp, P)      f32
    kl_ref    : SMEM (1,)         f32
    """
    P = feat_pad
    n_layers = len(layer_dims)

    h = x_ref[...]                       # (Bp, P); pad columns are exact zeros
    kl_total = jnp.float32(0.0)

    # Trace-time memoized validity masks (shared across layers with equal dims).
    w_masks = {}
    b_masks = {}

    for l, (in_f, out_f) in enumerate(layer_dims):
        out_p = _round_up(out_f, 8)      # sublane-aligned valid-row count

        # --- sample this layer's weights over the valid rows only.
        wmu = wmu_ref[l, 0:out_p, :]                       # (out_p, P)
        wrho = wrho_ref[l, 0:out_p, :]
        w_sigma = jax.nn.softplus(wrho)                    # stable log1p(exp(rho))
        nw = nw_ref[l, 0:out_p, :]
        w_top = wmu + w_sigma * nw                         # pad region is exact zero
        if out_p < P:                                      # widen rows back to P with
            w = jnp.concatenate(                           # constant zeros (sublane-
                [w_top, jnp.zeros((P - out_p, P), jnp.float32)], axis=0)  # aligned)
        else:
            w = w_top                                      # (P, P)

        bmu = bias_ref[2 * l:2 * l + 1, :]                 # (1, P)
        brho = bias_ref[2 * l + 1:2 * l + 2, :]
        b_sigma = jax.nn.softplus(brho)
        nb = nb_ref[l:l + 1, :]
        b = bmu + b_sigma * nb                             # (1, P); pad cols zero

        # y = h @ w.T without materializing a transpose: contract the in-feature dim
        # of both operands directly on the MXU.
        y = jax.lax.dot_general(h, w, (((1,), (1,)), ((), ())),
                                preferred_element_type=jnp.float32) + b
        if l < n_layers - 1:
            y = jnp.maximum(y, 0.0)
        h = y

        # --- KL(q || prior).  Noise independent, so only traced when requested.
        if compute_kl:
            prior_mu = prior_ref[4 * l]
            half_plv = prior_ref[4 * l + 1]
            inv_two_var = prior_ref[4 * l + 2]
            kl_prior = prior_ref[4 * l + 3]

            wkey = (out_p, out_f, in_f)
            if wkey not in w_masks:
                row = jax.lax.broadcasted_iota(jnp.int32, (out_p, P), 0)
                col = jax.lax.broadcasted_iota(jnp.int32, (out_p, P), 1)
                w_masks[wkey] = (row < out_f) & (col < in_f)
            if out_f not in b_masks:
                bcol = jax.lax.broadcasted_iota(jnp.int32, (1, P), 1)
                b_masks[out_f] = bcol < out_f

            # log(sqrt(prior_var)/sigma) == 0.5*prior_logvar - log(sigma)
            kl_w = (half_plv - jnp.log(w_sigma)
                    + (w_sigma * w_sigma + (wmu - prior_mu) ** 2) * inv_two_var - 0.5)
            kl_b = (half_plv - jnp.log(b_sigma)
                    + (b_sigma * b_sigma + (bmu - prior_mu) ** 2) * inv_two_var - 0.5)
            kl_total = (kl_total
                        + jnp.sum(jnp.where(w_masks[wkey], kl_w, 0.0))
                        + jnp.sum(jnp.where(b_masks[out_f], kl_b, 0.0))
                        + kl_prior)

    y_ref[...] = h.astype(y_ref.dtype)
    kl_ref[0] = kl_total if compute_kl else jnp.float32(0.0)


def hbnn_forward(x, params, noises=None, seed=0, compute_kl=True):
    """Fused HierarchicalBayesianNeuralNetwork forward.  Returns (output, kl_sum).

    `noises`: optional list of per-layer (noise_w, noise_b) arrays (stand-in for
    torch.randn_like).  If None they are drawn with jax.random from `seed`.
    `compute_kl=False` skips all KL work inside the kernel (KL is noise independent,
    so Monte-Carlo sampling loops should hoist it and call with False).
    """
    B, in0 = x.shape
    layer_dims = tuple((p["weight_mu"].shape[1], p["weight_mu"].shape[0])
                       for p in params)
    assert layer_dims[0][0] == in0
    L = len(layer_dims)

    max_dim = max(max(d) for d in layer_dims + ((in0, in0),))
    P = _round_up(max_dim, 128)          # lane-dense feature padding
    Bp = _round_up(B, 8)                 # sublane-aligned batch padding

    RHO_PAD = -20.0                      # sigma = softplus(-20) ~ 2e-9 in pad region

    def pad2(a, r, c, val=0.0):
        return jnp.pad(a, ((0, r - a.shape[0]), (0, c - a.shape[1])),
                       constant_values=val)

    wmu = jnp.stack([pad2(p["weight_mu"].astype(jnp.float32), P, P) for p in params])
    wrho = jnp.stack([pad2(p["weight_rho"].astype(jnp.float32), P, P, RHO_PAD)
                      for p in params])

    # Bias mu/rho packed into ONE slab: rows [bmu_0, brho_0, bmu_1, brho_1, ...].
    bias_rows = []
    for p in params:
        bias_rows.append(jnp.pad(p["bias_mu"].astype(jnp.float32),
                                 (0, P - p["bias_mu"].shape[0])))
        bias_rows.append(jnp.pad(p["bias_rho"].astype(jnp.float32),
                                 (0, P - p["bias_rho"].shape[0]),
                                 constant_values=RHO_PAD))
    bias = jnp.stack(bias_rows)
    bias = jnp.pad(bias, ((0, _round_up(2 * L, 8) - 2 * L), (0, 0)))

    xp = pad2(x.astype(jnp.float32), Bp, P)

    # Pre-reduce the per-layer prior scalars (no in-kernel scalar exp needed):
    #   [prior_mu, 0.5*prior_logvar, 0.5*exp(-prior_logvar), 0.5*mu^2 + 0.5*logvar^2]
    prior_rows = []
    for p in params:
        pmu = p["prior_mu"][0].astype(jnp.float32)
        plv = p["prior_logvar"][0].astype(jnp.float32)
        prior_rows.append(jnp.stack([pmu, 0.5 * plv, 0.5 * jnp.exp(-plv),
                                     0.5 * pmu ** 2 + 0.5 * plv ** 2]))
    prior = jnp.concatenate(prior_rows)                      # (4L,) flat SMEM

    # TODO(synk): draw noise in-kernel with pltpu.prng_seed/stateful_normal on a
    # TPU-only build (no interpret/CPU lowering exists for those primitives today).
    if noises is None:
        key = jax.random.PRNGKey(seed)
        noises = []
        for p in params:
            key, kw, kb = jax.random.split(key, 3)
            noises.append((jax.random.normal(kw, p["weight_mu"].shape, jnp.float32),
                           jax.random.normal(kb, p["bias_mu"].shape, jnp.float32)))

    nw = jnp.stack([pad2(nw_i.astype(jnp.float32), P, P) for (nw_i, _) in noises])
    nb = jnp.stack([jnp.pad(nb_i.astype(jnp.float32), (0, P - nb_i.shape[0]))
                    for (_, nb_i) in noises])
    nb = jnp.pad(nb, ((0, _round_up(L, 8) - L), (0, 0)))

    vmem = pl.BlockSpec(memory_space=pltpu.MemorySpace.VMEM)
    smem = pl.BlockSpec(memory_space=pltpu.MemorySpace.SMEM)

    kernel = functools.partial(_hbnn_fused_kernel, layer_dims=layer_dims,
                               feat_pad=P, compute_kl=compute_kl)

    y_pad, kl = pl.pallas_call(
        kernel,
        out_shape=(jax.ShapeDtypeStruct((Bp, P), jnp.float32),
                   jax.ShapeDtypeStruct((1,), jnp.float32)),
        in_specs=[smem, vmem, vmem, vmem, vmem, vmem, vmem],
        out_specs=(vmem, smem),
    )(prior, xp, wmu, wrho, bias, nw, nb)

    out_f = layer_dims[-1][1]
    return y_pad[:B, :out_f], kl[0]


def init_params(key, input_dim, hidden_dims, output_dim):
    dims = [input_dim] + list(hidden_dims) + [output_dim]
    params = []
    for i in range(len(dims) - 1):
        fan_in, fan_out = dims[i], dims[i + 1]
        key, k_w, k_b = jax.random.split(key, 3)
        # kaiming_uniform_(a=sqrt(5)) -> bound = 1/sqrt(fan_in)
        bound = 1.0 / math.sqrt(fan_in)
        params.append(dict(
            weight_mu=jax.random.uniform(k_w, (fan_out, fan_in), jnp.float32,
                                         -bound, bound),
            weight_rho=jnp.full((fan_out, fan_in), -5.0, jnp.float32),
            bias_mu=jax.random.uniform(k_b, (fan_out,), jnp.float32, -0.1, 0.1),
            bias_rho=jnp.full((fan_out,), -5.0, jnp.float32),
            prior_mu=jnp.zeros((1,), jnp.float32),
            prior_logvar=jnp.zeros((1,), jnp.float32),
        ))
    return params


def hbnn_reference(x, params, noises):
    """Pure-JAX reference with identical noise (mirrors the PyTorch module)."""
    kl_sum = jnp.float32(0.0)
    n = len(params)
    for i, (p, (nw, nb)) in enumerate(zip(params, noises)):
        w_sigma = jnp.log1p(jnp.exp(p["weight_rho"]))
        b_sigma = jnp.log1p(jnp.exp(p["bias_rho"]))
        w = p["weight_mu"] + w_sigma * nw
        b = p["bias_mu"] + b_sigma * nb
        x = x @ w.T + b
        if i < n - 1:
            x = jnp.maximum(x, 0.0)
        pmu = p["prior_mu"][0]
        plv = p["prior_logvar"][0]
        pvar = jnp.exp(plv)

        def kl_div(mu, sigma):
            return jnp.sum(jnp.log(jnp.sqrt(pvar) / sigma)
                           + (sigma ** 2 + (mu - pmu) ** 2) / (2.0 * pvar) - 0.5)

        kl_sum = kl_sum + (kl_div(p["weight_mu"], w_sigma)
                           + kl_div(p["bias_mu"], b_sigma)
                           + 0.5 * pmu ** 2 + 0.5 * plv ** 2)
    return x, kl_sum


if __name__ == "__main__":
    input_dim, hidden_dims, output_dim = 16, [32, 32], 8
    batch = 2

    key = jax.random.PRNGKey(0)
    key, k_x, k_p = jax.random.split(key, 3)
    x = jax.random.normal(k_x, (batch, input_dim), jnp.float32)
    params = init_params(k_p, input_dim, hidden_dims, output_dim)

    # Deterministic stand-in for torch.randn_like.
    noises = []
    for p in params:
        key, kw, kb = jax.random.split(key, 3)
        noises.append((jax.random.normal(kw, p["weight_mu"].shape, jnp.float32),
                       jax.random.normal(kb, p["bias_mu"].shape, jnp.float32)))

    # --- full path: sampled forward + KL in one fused kernel.
    y, kl = hbnn_forward(x, params, noises=noises, compute_kl=True)
    y = jax.block_until_ready(y)
    kl = jax.block_until_ready(kl)

    y_ref, kl_ref = hbnn_reference(x, params, noises)
    assert y.shape == (batch, output_dim)
    np.testing.assert_allclose(np.asarray(y), np.asarray(y_ref), rtol=1e-4, atol=1e-4)
    np.testing.assert_allclose(np.asarray(kl), np.asarray(kl_ref), rtol=1e-4, atol=1e-3)

    # --- sampling-only path (KL hoisted out of per-sample calls): same output,
    # no KL work traced into the kernel.
    y2, kl2 = hbnn_forward(x, params, noises=noises, compute_kl=False)
    y2 = jax.block_until_ready(y2)
    kl2 = jax.block_until_ready(kl2)
    np.testing.assert_allclose(np.asarray(y2), np.asarray(y), rtol=1e-6, atol=1e-6)
    assert float(kl2) == 0.0

    # --- convenience path: noise drawn by the wrapper with jax.random.
    y3, kl3 = hbnn_forward(x, params, noises=None, seed=123, compute_kl=True)
    y3 = jax.block_until_ready(y3)
    kl3 = jax.block_until_ready(kl3)
    assert y3.shape == (batch, output_dim)
    assert np.all(np.isfinite(np.asarray(y3)))
    np.testing.assert_allclose(np.asarray(kl3), np.asarray(kl_ref), rtol=1e-4, atol=1e-3)

    print("KERNEL_OK")
</pallas_src>

<mosaic_0001>
module attributes {stable_mosaic.version = 11 : i64} {
  func.func @_hbnn_fused_kernel(%arg0: memref<12xf32, #tpu.memory_space<smem>>, %arg1: memref<8x128xf32, #tpu.memory_space<vmem>>, %arg2: memref<3x128x128xf32, #tpu.memory_space<vmem>>, %arg3: memref<3x128x128xf32, #tpu.memory_space<vmem>>, %arg4: memref<8x128xf32, #tpu.memory_space<vmem>>, %arg5: memref<3x128x128xf32, #tpu.memory_space<vmem>>, %arg6: memref<8x128xf32, #tpu.memory_space<vmem>>, %arg7: memref<8x128xf32, #tpu.memory_space<vmem>>, %arg8: memref<1xf32, #tpu.memory_space<smem>>) attributes {dimension_semantics = [], scalar_prefetch = 0 : i64, scratch_operands = 0 : i64, tpu.core_type = #tpu.core_type<tc>} {
    %c0 = arith.constant 0 : index
    %c0_0 = arith.constant 0 : index
    %0 = vector.load %arg1[%c0, %c0_0] : memref<8x128xf32, #tpu.memory_space<vmem>>, vector<8x128xf32>
    %c0_1 = arith.constant 0 : index
    %c0_2 = arith.constant 0 : index
    %c0_3 = arith.constant 0 : index
    %1 = vector.load %arg2[%c0_1, %c0_2, %c0_3] : memref<3x128x128xf32, #tpu.memory_space<vmem>>, vector<1x32x128xf32>
    %2 = vector.shape_cast %1 : vector<1x32x128xf32> to vector<32x128xf32>
    %c0_4 = arith.constant 0 : index
    %c0_5 = arith.constant 0 : index
    %c0_6 = arith.constant 0 : index
    %3 = vector.load %arg3[%c0_4, %c0_5, %c0_6] : memref<3x128x128xf32, #tpu.memory_space<vmem>>, vector<1x32x128xf32>
    %4 = vector.shape_cast %3 : vector<1x32x128xf32> to vector<32x128xf32>
    %cst = arith.constant 0.000000e+00 : f32
    %5 = vector.broadcast %cst : f32 to vector<32x128xf32>
    %6 = arith.maximumf %4, %5 : vector<32x128xf32>
    %7 = vector.broadcast %cst : f32 to vector<32x128xf32>
    %8 = arith.subf %4, %7 : vector<32x128xf32>
    %9 = arith.cmpf one, %8, %8 : vector<32x128xf32>
    %10 = vector.broadcast %cst : f32 to vector<32x128xf32>
    %11 = arith.addf %4, %10 : vector<32x128xf32>
    %12 = math.absf %8 : vector<32x128xf32>
    %cst_7 = arith.constant 0.000000e+00 : f32
    %13 = vector.broadcast %cst_7 : f32 to vector<32x128xf32>
    %14 = arith.subf %13, %12 : vector<32x128xf32>
    %15 = math.exp %14 : vector<32x128xf32>
    %16 = math.log1p %15 : vector<32x128xf32>
    %17 = arith.addf %6, %16 : vector<32x128xf32>
    %18 = arith.select %9, %11, %17 : vector<32x128xi1>, vector<32x128xf32>
    %c0_8 = arith.constant 0 : index
    %c0_9 = arith.constant 0 : index
    %c0_10 = arith.constant 0 : index
    %19 = vector.load %arg5[%c0_8, %c0_9, %c0_10] : memref<3x128x128xf32, #tpu.memory_space<vmem>>, vector<1x32x128xf32>
    %20 = vector.shape_cast %19 : vector<1x32x128xf32> to vector<32x128xf32>
    %21 = arith.mulf %18, %20 : vector<32x128xf32>
    %22 = arith.addf %2, %21 : vector<32x128xf32>
    %cst_11 = arith.constant 0.000000e+00 : f32
    %23 = vector.broadcast %cst_11 : f32 to vector<96x128xf32>
    %24 = tpu.concatenate %22, %23 in 0 : vector<32x128xf32>, vector<96x128xf32> -> vector<128x128xf32>
    %c0_12 = arith.constant 0 : index
    %c0_13 = arith.constant 0 : index
    %25 = vector.load %arg4[%c0_12, %c0_13] : memref<8x128xf32, #tpu.memory_space<vmem>>, vector<1x128xf32>
    %c1 = arith.constant 1 : index
    %c0_14 = arith.constant 0 : index
    %26 = vector.load %arg4[%c1, %c0_14] : memref<8x128xf32, #tpu.memory_space<vmem>>, vector<1x128xf32>
    %cst_15 = arith.constant 0.000000e+00 : f32
    %27 = vector.broadcast %cst_15 : f32 to vector<1x128xf32>
    %28 = arith.maximumf %26, %27 : vector<1x128xf32>
    %29 = vector.broadcast %cst_15 : f32 to vector<1x128xf32>
    %30 = arith.subf %26, %29 : vector<1x128xf32>
    %31 = arith.cmpf one, %30, %30 : vector<1x128xf32>
    %32 = vector.broadcast %cst_15 : f32 to vector<1x128xf32>
    %33 = arith.addf %26, %32 : vector<1x128xf32>
    %34 = math.absf %30 : vector<1x128xf32>
    %cst_16 = arith.constant 0.000000e+00 : f32
    %35 = vector.broadcast %cst_16 : f32 to vector<1x128xf32>
    %36 = arith.subf %35, %34 : vector<1x128xf32>
    %37 = math.exp %36 : vector<1x128xf32>
    %38 = math.log1p %37 : vector<1x128xf32>
    %39 = arith.addf %28, %38 : vector<1x128xf32>
    %40 = arith.select %31, %33, %39 : vector<1x128xi1>, vector<1x128xf32>
    %c0_17 = arith.constant 0 : index
    %c0_18 = arith.constant 0 : index
    %41 = vector.load %arg6[%c0_17, %c0_18] : memref<8x128xf32, #tpu.memory_space<vmem>>, vector<1x128xf32>
    %42 = arith.mulf %40, %41 : vector<1x128xf32>
    %43 = arith.addf %25, %42 : vector<1x128xf32>
    %cst_19 = arith.constant dense<0.000000e+00> : vector<8x128xf32>
    %44 = tpu.matmul %0, %24, %cst_19 {dimension_numbers = #tpu.dot_dimension_numbers<[1], [1], [0], [0], [0, 0, 1, 0], [], []>} : vector<8x128xf32>, vector<128x128xf32>, vector<8x128xf32> -> vector<8x128xf32>
    %45 = vector.broadcast %43 : vector<1x128xf32> to vector<8x128xf32>
    %46 = arith.addf %44, %45 : vector<8x128xf32>
    %cst_20 = arith.constant 0.000000e+00 : f32
    %47 = vector.broadcast %cst_20 : f32 to vector<8x128xf32>
    %48 = arith.maximumf %46, %47 : vector<8x128xf32>
    %c0_21 = arith.constant 0 : index
    %49 = memref.load %arg0[%c0_21] : memref<12xf32, #tpu.memory_space<smem>>
    %c1_22 = arith.constant 1 : index
    %50 = memref.load %arg0[%c1_22] : memref<12xf32, #tpu.memory_space<smem>>
    %c2 = arith.constant 2 : index
    %51 = memref.load %arg0[%c2] : memref<12xf32, #tpu.memory_space<smem>>
    %c3 = arith.constant 3 : index
    %52 = memref.load %arg0[%c3] : memref<12xf32, #tpu.memory_space<smem>>
    %53 = tpu.iota {dimensions = array<i32: 0>} : vector<32x128xi32>
    %54 = tpu.iota {dimensions = array<i32: 1>} : vector<32x128xi32>
    %c32_i32 = arith.constant 32 : i32
    %55 = vector.broadcast %c32_i32 : i32 to vector<32x128xi32>
    %56 = arith.cmpi slt, %53, %55 : vector<32x128xi32>
    %c16_i32 = arith.constant 16 : i32
    %57 = vector.broadcast %c16_i32 : i32 to vector<32x128xi32>
    %58 = arith.cmpi slt, %54, %57 : vector<32x128xi32>
    %59 = arith.andi %56, %58 : vector<32x128xi1>
    %60 = tpu.iota {dimensions = array<i32: 1>} : vector<1x128xi32>
    %c32_i32_23 = arith.constant 32 : i32
    %61 = vector.broadcast %c32_i32_23 : i32 to vector<1x128xi32>
    %62 = arith.cmpi slt, %60, %61 : vector<1x128xi32>
    %63 = math.log %18 : vector<32x128xf32>
    %64 = vector.broadcast %50 : f32 to vector<32x128xf32>
    %65 = arith.subf %64, %63 : vector<32x128xf32>
    %66 = arith.mulf %18, %18 : vector<32x128xf32>
    %67 = vector.broadcast %49 : f32 to vector<32x128xf32>
    %68 = arith.subf %2, %67 : vector<32x128xf32>
    %69 = arith.mulf %68, %68 : vector<32x128xf32>
    %70 = arith.addf %66, %69 : vector<32x128xf32>
    %71 = vector.broadcast %51 : f32 to vector<32x128xf32>
    %72 = arith.mulf %70, %71 : vector<32x128xf32>
    %73 = arith.addf %65, %72 : vector<32x128xf32>
    %cst_24 = arith.constant 5.000000e-01 : f32
    %74 = vector.broadcast %cst_24 : f32 to vector<32x128xf32>
    %75 = arith.subf %73, %74 : vector<32x128xf32>
    %76 = math.log %40 : vector<1x128xf32>
    %77 = vector.broadcast %50 : f32 to vector<1x128xf32>
    %78 = arith.subf %77, %76 : vector<1x128xf32>
    %79 = arith.mulf %40, %40 : vector<1x128xf32>
    %80 = vector.broadcast %49 : f32 to vector<1x128xf32>
    %81 = arith.subf %25, %80 : vector<1x128xf32>
    %82 = arith.mulf %81, %81 : vector<1x128xf32>
    %83 = arith.addf %79, %82 : vector<1x128xf32>
    %84 = vector.broadcast %51 : f32 to vector<1x128xf32>
    %85 = arith.mulf %83, %84 : vector<1x128xf32>
    %86 = arith.addf %78, %85 : vector<1x128xf32>
    %cst_25 = arith.constant 5.000000e-01 : f32
    %87 = vector.broadcast %cst_25 : f32 to vector<1x128xf32>
    %88 = arith.subf %86, %87 : vector<1x128xf32>
    %cst_26 = arith.constant 0.000000e+00 : f32
    %89 = vector.broadcast %cst_26 : f32 to vector<32x128xf32>
    %90 = arith.select %59, %75, %89 : vector<32x128xi1>, vector<32x128xf32>
    %91 = vector.shape_cast %90 : vector<32x128xf32> to vector<1x32x128xf32>
    %cst_27 = arith.constant dense<0.000000e+00> : vector<1xf32>
    %92 = vector.multi_reduction <add>, %91, %cst_27 [1, 2] : vector<1x32x128xf32> to vector<1xf32>
    %93 = vector.shape_cast %92 : vector<1xf32> to vector<1x1x1xf32>
    %94 = vector.extract %93[0, 0, 0] : f32 from vector<1x1x1xf32>
    %cst_28 = arith.constant 0.000000e+00 : f32
    %95 = arith.addf %cst_28, %94 : f32
    %cst_29 = arith.constant 0.000000e+00 : f32
    %96 = vector.broadcast %cst_29 : f32 to vector<1x128xf32>
    %97 = arith.select %62, %88, %96 : vector<1x128xi1>, vector<1x128xf32>
    %98 = vector.shape_cast %97 : vector<1x128xf32> to vector<1x1x128xf32>
    %cst_30 = arith.constant dense<0.000000e+00> : vector<1xf32>
    %99 = vector.multi_reduction <add>, %98, %cst_30 [1, 2] : vector<1x1x128xf32> to vector<1xf32>
    %100 = vector.shape_cast %99 : vector<1xf32> to vector<1x1x1xf32>
    %101 = vector.extract %100[0, 0, 0] : f32 from vector<1x1x1xf32>
    %102 = arith.addf %95, %101 : f32
    %103 = arith.addf %102, %52 : f32
    %c1_31 = arith.constant 1 : index
    %c0_32 = arith.constant 0 : index
    %c0_33 = arith.constant 0 : index
    %104 = vector.load %arg2[%c1_31, %c0_32, %c0_33] : memref<3x128x128xf32, #tpu.memory_space<vmem>>, vector<1x32x128xf32>
    %105 = vector.shape_cast %104 : vector<1x32x128xf32> to vector<32x128xf32>
    %c1_34 = arith.constant 1 : index
    %c0_35 = arith.constant 0 : index
    %c0_36 = arith.constant 0 : index
    %106 = vector.load %arg3[%c1_34, %c0_35, %c0_36] : memref<3x128x128xf32, #tpu.memory_space<vmem>>, vector<1x32x128xf32>
    %107 = vector.shape_cast %106 : vector<1x32x128xf32> to vector<32x128xf32>
    %cst_37 = arith.constant 0.000000e+00 : f32
    %108 = vector.broadcast %cst_37 : f32 to vector<32x128xf32>
    %109 = arith.maximumf %107, %108 : vector<32x128xf32>
    %110 = vector.broadcast %cst_37 : f32 to vector<32x128xf32>
    %111 = arith.subf %107, %110 : vector<32x128xf32>
    %112 = arith.cmpf one, %111, %111 : vector<32x128xf32>
    %113 = vector.broadcast %cst_37 : f32 to vector<32x128xf32>
    %114 = arith.addf %107, %113 : vector<32x128xf32>
    %115 = math.absf %111 : vector<32x128xf32>
    %cst_38 = arith.constant 0.000000e+00 : f32
    %116 = vector.broadcast %cst_38 : f32 to vector<32x128xf32>
    %117 = arith.subf %116, %115 : vector<32x128xf32>
    %118 = math.exp %117 : vector<32x128xf32>
    %119 = math.log1p %118 : vector<32x128xf32>
    %120 = arith.addf %109, %119 : vector<32x128xf32>
    %121 = arith.select %112, %114, %120 : vector<32x128xi1>, vector<32x128xf32>
    %c1_39 = arith.constant 1 : index
    %c0_40 = arith.constant 0 : index
    %c0_41 = arith.constant 0 : index
    %122 = vector.load %arg5[%c1_39, %c0_40, %c0_41] : memref<3x128x128xf32, #tpu.memory_space<vmem>>, vector<1x32x128xf32>
    %123 = vector.shape_cast %122 : vector<1x32x128xf32> to vector<32x128xf32>
    %124 = arith.mulf %121, %123 : vector<32x128xf32>
    %125 = arith.addf %105, %124 : vector<32x128xf32>
    %cst_42 = arith.constant 0.000000e+00 : f32
    %126 = vector.broadcast %cst_42 : f32 to vector<96x128xf32>
    %127 = tpu.concatenate %125, %126 in 0 : vector<32x128xf32>, vector<96x128xf32> -> vector<128x128xf32>
    %c2_43 = arith.constant 2 : index
    %c0_44 = arith.constant 0 : index
    %128 = vector.load %arg4[%c2_43, %c0_44] : memref<8x128xf32, #tpu.memory_space<vmem>>, vector<1x128xf32>
    %c3_45 = arith.constant 3 : index
    %c0_46 = arith.constant 0 : index
    %129 = vector.load %arg4[%c3_45, %c0_46] : memref<8x128xf32, #tpu.memory_space<vmem>>, vector<1x128xf32>
    %cst_47 = arith.constant 0.000000e+00 : f32
    %130 = vector.broadcast %cst_47 : f32 to vector<1x128xf32>
    %131 = arith.maximumf %129, %130 : vector<1x128xf32>
    %132 = vector.broadcast %cst_47 : f32 to vector<1x128xf32>
    %133 = arith.subf %129, %132 : vector<1x128xf32>
    %134 = arith.cmpf one, %133, %133 : vector<1x128xf32>
    %135 = vector.broadcast %cst_47 : f32 to vector<1x128xf32>
    %136 = arith.addf %129, %135 : vector<1x128xf32>
    %137 = math.absf %133 : vector<1x128xf32>
    %cst_48 = arith.constant 0.000000e+00 : f32
    %138 = vector.broadcast %cst_48 : f32 to vector<1x128xf32>
    %139 = arith.subf %138, %137 : vector<1x128xf32>
    %140 = math.exp %139 : vector<1x128xf32>
    %141 = math.log1p %140 : vector<1x128xf32>
    %142 = arith.addf %131, %141 : vector<1x128xf32>
    %143 = arith.select %134, %136, %142 : vector<1x128xi1>, vector<1x128xf32>
    %c1_49 = arith.constant 1 : index
    %c0_50 = arith.constant 0 : index
    %144 = vector.load %arg6[%c1_49, %c0_50] : memref<8x128xf32, #tpu.memory_space<vmem>>, vector<1x128xf32>
    %145 = arith.mulf %143, %144 : vector<1x128xf32>
    %146 = arith.addf %128, %145 : vector<1x128xf32>
    %cst_51 = arith.constant dense<0.000000e+00> : vector<8x128xf32>
    %147 = tpu.matmul %48, %127, %cst_51 {dimension_numbers = #tpu.dot_dimension_numbers<[1], [1], [0], [0], [0, 0, 1, 0], [], []>} : vector<8x128xf32>, vector<128x128xf32>, vector<8x128xf32> -> vector<8x128xf32>
    %148 = vector.broadcast %146 : vector<1x128xf32> to vector<8x128xf32>
    %149 = arith.addf %147, %148 : vector<8x128xf32>
    %cst_52 = arith.constant 0.000000e+00 : f32
    %150 = vector.broadcast %cst_52 : f32 to vector<8x128xf32>
    %151 = arith.maximumf %149, %150 : vector<8x128xf32>
    %c4 = arith.constant 4 : index
    %152 = memref.load %arg0[%c4] : memref<12xf32, #tpu.memory_space<smem>>
    %c5 = arith.constant 5 : index
    %153 = memref.load %arg0[%c5] : memref<12xf32, #tpu.memory_space<smem>>
    %c6 = arith.constant 6 : index
    %154 = memref.load %arg0[%c6] : memref<12xf32, #tpu.memory_space<smem>>
    %c7 = arith.constant 7 : index
    %155 = memref.load %arg0[%c7] : memref<12xf32, #tpu.memory_space<smem>>
    %156 = tpu.iota {dimensions = array<i32: 0>} : vector<32x128xi32>
    %157 = tpu.iota {dimensions = array<i32: 1>} : vector<32x128xi32>
    %c32_i32_53 = arith.constant 32 : i32
    %158 = vector.broadcast %c32_i32_53 : i32 to vector<32x128xi32>
    %159 = arith.cmpi slt, %156, %158 : vector<32x128xi32>
    %c32_i32_54 = arith.constant 32 : i32
    %160 = vector.broadcast %c32_i32_54 : i32 to vector<32x128xi32>
    %161 = arith.cmpi slt, %157, %160 : vector<32x128xi32>
    %162 = arith.andi %159, %161 : vector<32x128xi1>
    %163 = math.log %121 : vector<32x128xf32>
    %164 = vector.broadcast %153 : f32 to vector<32x128xf32>
    %165 = arith.subf %164, %163 : vector<32x128xf32>
    %166 = arith.mulf %121, %121 : vector<32x128xf32>
    %167 = vector.broadcast %152 : f32 to vector<32x128xf32>
    %168 = arith.subf %105, %167 : vector<32x128xf32>
    %169 = arith.mulf %168, %168 : vector<32x128xf32>
    %170 = arith.addf %166, %169 : vector<32x128xf32>
    %171 = vector.broadcast %154 : f32 to vector<32x128xf32>
    %172 = arith.mulf %170, %171 : vector<32x128xf32>
    %173 = arith.addf %165, %172 : vector<32x128xf32>
    %cst_55 = arith.constant 5.000000e-01 : f32
    %174 = vector.broadcast %cst_55 : f32 to vector<32x128xf32>
    %175 = arith.subf %173, %174 : vector<32x128xf32>
    %176 = math.log %143 : vector<1x128xf32>
    %177 = vector.broadcast %153 : f32 to vector<1x128xf32>
    %178 = arith.subf %177, %176 : vector<1x128xf32>
    %179 = arith.mulf %143, %143 : vector<1x128xf32>
    %180 = vector.broadcast %152 : f32 to vector<1x128xf32>
    %181 = arith.subf %128, %180 : vector<1x128xf32>
    %182 = arith.mulf %181, %181 : vector<1x128xf32>
    %183 = arith.addf %179, %182 : vector<1x128xf32>
    %184 = vector.broadcast %154 : f32 to vector<1x128xf32>
    %185 = arith.mulf %183, %184 : vector<1x128xf32>
    %186 = arith.addf %178, %185 : vector<1x128xf32>
    %cst_56 = arith.constant 5.000000e-01 : f32
    %187 = vector.broadcast %cst_56 : f32 to vector<1x128xf32>
    %188 = arith.subf %186, %187 : vector<1x128xf32>
    %cst_57 = arith.constant 0.000000e+00 : f32
    %189 = vector.broadcast %cst_57 : f32 to vector<32x128xf32>
    %190 = arith.select %162, %175, %189 : vector<32x128xi1>, vector<32x128xf32>
    %191 = vector.shape_cast %190 : vector<32x128xf32> to vector<1x32x128xf32>
    %cst_58 = arith.constant dense<0.000000e+00> : vector<1xf32>
    %192 = vector.multi_reduction <add>, %191, %cst_58 [1, 2] : vector<1x32x128xf32> to vector<1xf32>
    %193 = vector.shape_cast %192 : vector<1xf32> to vector<1x1x1xf32>
    %194 = vector.extract %193[0, 0, 0] : f32 from vector<1x1x1xf32>
    %195 = arith.addf %103, %194 : f32
    %cst_59 = arith.constant 0.000000e+00 : f32
    %196 = vector.broadcast %cst_59 : f32 to vector<1x128xf32>
    %197 = arith.select %62, %188, %196 : vector<1x128xi1>, vector<1x128xf32>
    %198 = vector.shape_cast %197 : vector<1x128xf32> to vector<1x1x128xf32>
    %cst_60 = arith.constant dense<0.000000e+00> : vector<1xf32>
    %199 = vector.multi_reduction <add>, %198, %cst_60 [1, 2] : vector<1x1x128xf32> to vector<1xf32>
    %200 = vector.shape_cast %199 : vector<1xf32> to vector<1x1x1xf32>
    %201 = vector.extract %200[0, 0, 0] : f32 from vector<1x1x1xf32>
    %202 = arith.addf %195, %201 : f32
    %203 = arith.addf %202, %155 : f32
    %c2_61 = arith.constant 2 : index
    %c0_62 = arith.constant 0 : index
    %c0_63 = arith.constant 0 : index
    %204 = vector.load %arg2[%c2_61, %c0_62, %c0_63] : memref<3x128x128xf32, #tpu.memory_space<vmem>>, vector<1x8x128xf32>
    %205 = vector.shape_cast %204 : vector<1x8x128xf32> to vector<8x128xf32>
    %c2_64 = arith.constant 2 : index
    %c0_65 = arith.constant 0 : index
    %c0_66 = arith.constant 0 : index
    %206 = vector.load %arg3[%c2_64, %c0_65, %c0_66] : memref<3x128x128xf32, #tpu.memory_space<vmem>>, vector<1x8x128xf32>
    %207 = vector.shape_cast %206 : vector<1x8x128xf32> to vector<8x128xf32>
    %cst_67 = arith.constant 0.000000e+00 : f32
    %208 = vector.broadcast %cst_67 : f32 to vector<8x128xf32>
    %209 = arith.maximumf %207, %208 : vector<8x128xf32>
    %210 = vector.broadcast %cst_67 : f32 to vector<8x128xf32>
    %211 = arith.subf %207, %210 : vector<8x128xf32>
    %212 = arith.cmpf one, %211, %211 : vector<8x128xf32>
    %213 = vector.broadcast %cst_67 : f32 to vector<8x128xf32>
    %214 = arith.addf %207, %213 : vector<8x128xf32>
    %215 = math.absf %211 : vector<8x128xf32>
    %cst_68 = arith.constant 0.000000e+00 : f32
    %216 = vector.broadcast %cst_68 : f32 to vector<8x128xf32>
    %217 = arith.subf %216, %215 : vector<8x128xf32>
    %218 = math.exp %217 : vector<8x128xf32>
    %219 = math.log1p %218 : vector<8x128xf32>
    %220 = arith.addf %209, %219 : vector<8x128xf32>
    %221 = arith.select %212, %214, %220 : vector<8x128xi1>, vector<8x128xf32>
    %c2_69 = arith.constant 2 : index
    %c0_70 = arith.constant 0 : index
    %c0_71 = arith.constant 0 : index
    %222 = vector.load %arg5[%c2_69, %c0_70, %c0_71] : memref<3x128x128xf32, #tpu.memory_space<vmem>>, vector<1x8x128xf32>
    %223 = vector.shape_cast %222 : vector<1x8x128xf32> to vector<8x128xf32>
    %224 = arith.mulf %221, %223 : vector<8x128xf32>
    %225 = arith.addf %205, %224 : vector<8x128xf32>
    %cst_72 = arith.constant 0.000000e+00 : f32
    %226 = vector.broadcast %cst_72 : f32 to vector<120x128xf32>
    %227 = tpu.concatenate %225, %226 in 0 : vector<8x128xf32>, vector<120x128xf32> -> vector<128x128xf32>
    %c4_73 = arith.constant 4 : index
    %c0_74 = arith.constant 0 : index
    %228 = vector.load %arg4[%c4_73, %c0_74] : memref<8x128xf32, #tpu.memory_space<vmem>>, vector<1x128xf32>
    %c5_75 = arith.constant 5 : index
    %c0_76 = arith.constant 0 : index
    %229 = vector.load %arg4[%c5_75, %c0_76] : memref<8x128xf32, #tpu.memory_space<vmem>>, vector<1x128xf32>
    %cst_77 = arith.constant 0.000000e+00 : f32
    %230 = vector.broadcast %cst_77 : f32 to vector<1x128xf32>
    %231 = arith.maximumf %229, %230 : vector<1x128xf32>
    %232 = vector.broadcast %cst_77 : f32 to vector<1x128xf32>
    %233 = arith.subf %229, %232 : vector<1x128xf32>
    %234 = arith.cmpf one, %233, %233 : vector<1x128xf32>
    %235 = vector.broadcast %cst_77 : f32 to vector<1x128xf32>
    %236 = arith.addf %229, %235 : vector<1x128xf32>
    %237 = math.absf %233 : vector<1x128xf32>
    %cst_78 = arith.constant 0.000000e+00 : f32
    %238 = vector.broadcast %cst_78 : f32 to vector<1x128xf32>
    %239 = arith.subf %238, %237 : vector<1x128xf32>
    %240 = math.exp %239 : vector<1x128xf32>
    %241 = math.log1p %240 : vector<1x128xf32>
    %242 = arith.addf %231, %241 : vector<1x128xf32>
    %243 = arith.select %234, %236, %242 : vector<1x128xi1>, vector<1x128xf32>
    %c2_79 = arith.constant 2 : index
    %c0_80 = arith.constant 0 : index
    %244 = vector.load %arg6[%c2_79, %c0_80] : memref<8x128xf32, #tpu.memory_space<vmem>>, vector<1x128xf32>
    %245 = arith.mulf %243, %244 : vector<1x128xf32>
    %246 = arith.addf %228, %245 : vector<1x128xf32>
    %cst_81 = arith.constant dense<0.000000e+00> : vector<8x128xf32>
    %247 = tpu.matmul %151, %227, %cst_81 {dimension_numbers = #tpu.dot_dimension_numbers<[1], [1], [0], [0], [0, 0, 1, 0], [], []>} : vector<8x128xf32>, vector<128x128xf32>, vector<8x128xf32> -> vector<8x128xf32>
    %248 = vector.broadcast %246 : vector<1x128xf32> to vector<8x128xf32>
    %249 = arith.addf %247, %248 : vector<8x128xf32>
    %c8 = arith.constant 8 : index
    %250 = memref.load %arg0[%c8] : memref<12xf32, #tpu.memory_space<smem>>
    %c9 = arith.constant 9 : index
    %251 = memref.load %arg0[%c9] : memref<12xf32, #tpu.memory_space<smem>>
    %c10 = arith.constant 10 : index
    %252 = memref.load %arg0[%c10] : memref<12xf32, #tpu.memory_space<smem>>
    %c11 = arith.constant 11 : index
    %253 = memref.load %arg0[%c11] : memref<12xf32, #tpu.memory_space<smem>>
    %254 = tpu.iota {dimensions = array<i32: 0>} : vector<8x128xi32>
    %255 = tpu.iota {dimensions = array<i32: 1>} : vector<8x128xi32>
    %c8_i32 = arith.constant 8 : i32
    %256 = vector.broadcast %c8_i32 : i32 to vector<8x128xi32>
    %257 = arith.cmpi slt, %254, %256 : vector<8x128xi32>
    %c32_i32_82 = arith.constant 32 : i32
    %258 = vector.broadcast %c32_i32_82 : i32 to vector<8x128xi32>
    %259 = arith.cmpi slt, %255, %258 : vector<8x128xi32>
    %260 = arith.andi %257, %259 : vector<8x128xi1>
    %261 = tpu.iota {dimensions = array<i32: 1>} : vector<1x128xi32>
    %c8_i32_83 = arith.constant 8 : i32
    %262 = vector.broadcast %c8_i32_83 : i32 to vector<1x128xi32>
    %263 = arith.cmpi slt, %261, %262 : vector<1x128xi32>
    %264 = math.log %221 : vector<8x128xf32>
    %265 = vector.broadcast %251 : f32 to vector<8x128xf32>
    %266 = arith.subf %265, %264 : vector<8x128xf32>
    %267 = arith.mulf %221, %221 : vector<8x128xf32>
    %268 = vector.broadcast %250 : f32 to vector<8x128xf32>
    %269 = arith.subf %205, %268 : vector<8x128xf32>
    %270 = arith.mulf %269, %269 : vector<8x128xf32>
    %271 = arith.addf %267, %270 : vector<8x128xf32>
    %272 = vector.broadcast %252 : f32 to vector<8x128xf32>
    %273 = arith.mulf %271, %272 : vector<8x128xf32>
    %274 = arith.addf %266, %273 : vector<8x128xf32>
    %cst_84 = arith.constant 5.000000e-01 : f32
    %275 = vector.broadcast %cst_84 : f32 to vector<8x128xf32>
    %276 = arith.subf %274, %275 : vector<8x128xf32>
    %277 = math.log %243 : vector<1x128xf32>
    %278 = vector.broadcast %251 : f32 to vector<1x128xf32>
    %279 = arith.subf %278, %277 : vector<1x128xf32>
    %280 = arith.mulf %243, %243 : vector<1x128xf32>
    %281 = vector.broadcast %250 : f32 to vector<1x128xf32>
    %282 = arith.subf %228, %281 : vector<1x128xf32>
    %283 = arith.mulf %282, %282 : vector<1x128xf32>
    %284 = arith.addf %280, %283 : vector<1x128xf32>
    %285 = vector.broadcast %252 : f32 to vector<1x128xf32>
    %286 = arith.mulf %284, %285 : vector<1x128xf32>
    %287 = arith.addf %279, %286 : vector<1x128xf32>
    %cst_85 = arith.constant 5.000000e-01 : f32
    %288 = vector.broadcast %cst_85 : f32 to vector<1x128xf32>
    %289 = arith.subf %287, %288 : vector<1x128xf32>
    %cst_86 = arith.constant 0.000000e+00 : f32
    %290 = vector.broadcast %cst_86 : f32 to vector<8x128xf32>
    %291 = arith.select %260, %276, %290 : vector<8x128xi1>, vector<8x128xf32>
    %292 = vector.shape_cast %291 : vector<8x128xf32> to vector<1x8x128xf32>
    %cst_87 = arith.constant dense<0.000000e+00> : vector<1xf32>
    %293 = vector.multi_reduction <add>, %292, %cst_87 [1, 2] : vector<1x8x128xf32> to vector<1xf32>
    %294 = vector.shape_cast %293 : vector<1xf32> to vector<1x1x1xf32>
    %295 = vector.extract %294[0, 0, 0] : f32 from vector<1x1x1xf32>
    %296 = arith.addf %203, %295 : f32
    %cst_88 = arith.constant 0.000000e+00 : f32
    %297 = vector.broadcast %cst_88 : f32 to vector<1x128xf32>
    %298 = arith.select %263, %289, %297 : vector<1x128xi1>, vector<1x128xf32>
    %299 = vector.shape_cast %298 : vector<1x128xf32> to vector<1x1x128xf32>
    %cst_89 = arith.constant dense<0.000000e+00> : vector<1xf32>
    %300 = vector.multi_reduction <add>, %299, %cst_89 [1, 2] : vector<1x1x128xf32> to vector<1xf32>
    %301 = vector.shape_cast %300 : vector<1xf32> to vector<1x1x1xf32>
    %302 = vector.extract %301[0, 0, 0] : f32 from vector<1x1x1xf32>
    %303 = arith.addf %296, %302 : f32
    %304 = arith.addf %303, %253 : f32
    %c0_90 = arith.constant 0 : index
    %c0_91 = arith.constant 0 : index
    %305 = vector.load %arg7[%c0_90, %c0_91] : memref<8x128xf32, #tpu.memory_space<vmem>>, vector<8x128xf32>
    tpu.vector_store %arg7[%c0_90, %c0_91], %249 {strides = array<i32>} : memref<8x128xf32, #tpu.memory_space<vmem>>, vector<8x128xf32>,
    %c0_92 = arith.constant 0 : index
    %306 = memref.load %arg8[%c0_92] : memref<1xf32, #tpu.memory_space<smem>>
    memref.store %304, %arg8[%c0_92] : memref<1xf32, #tpu.memory_space<smem>>
    return
  }
}

</mosaic_0001>

<bundles_post_ra>
// kernel: tpu_custom_call.1
= control target key start
LH: loop header
LB: loop body
LE: loop exit
PB: predicated region body
PF: predicated region fallthrough
CT: control target
= control target key end

     0   :  { %14 = vsyncpa [#allocation5], 0  ;;  %s1480_s0 = inlined_call_operand.hbm [shape: f32[12], index: 0, kind: input, shape index: {}]   ;;  %s1481_s1 = inlined_call_operand.hbm [shape: f32[8,128], index: 1, kind: input, shape index: {}]   ;;  %s1482_s2 = inlined_call_operand.hbm [shape: f32[3,128,128], index: 2, kind: input, shape index: {}]   ;;  %s1483_s3 = inlined_call_operand.hbm [shape: f32[3,128,128], index: 3, kind: input, shape index: {}]   ;;  %s1484_s4 = inlined_call_operand.hbm [shape: f32[8,128], index: 4, kind: input, shape index: {}]   ;;  %s1485_s5 = inlined_call_operand.hbm [shape: f32[3,128,128], index: 5, kind: input, shape index: {}]   ;;  %s1486_s6 = inlined_call_operand.hbm [shape: f32[8,128], index: 6, kind: input, shape index: {}]   ;;  %s1487_s7 = inlined_call_operand.hbm [shape: f32[8,128], index: 7, kind: output, shape index: {0}]   ;;  %s1488_s8 = inlined_call_operand.hbm [shape: f32[1], index: 8, kind: output, shape index: {1}]  }
   0x1   :  { %15 = vsyncpa [#allocation3], 0 }
   0x2   :  { %16 = vsyncpa [#allocation9], 0 }
   0x3   :  { %17 = vsyncpa [#allocation12], 0 }
   0x4   :  { %18 = vsyncpa [#allocation15], 0 }
   0x5   :  { %19 = vsyncpa [#allocation4], 0  ;;  %s45_s29 = sshll.u32 %s1482_s2, 4  ;;  %s46_s29 = int_to_ptr.hbm [resolvable:$true] %s45_s29 }
   0x6   :  { %20 = vsyncpa [#allocation6], 0  ;;  %s1092_s30 = smov [#allocation8]   ;;  %s72_s12 = sshll.u32 %s1484_s4, 4  ;;  %s73_s12 = int_to_ptr.hbm [resolvable:$true] %s72_s12 }
   0x7   :  { %s47_s9 = sshll.u32 %s1092_s30, 4  ;;  %s1093_s13 = smov 128   ;;  %s48_s9 = int_to_ptr.vmem [resolvable:$true] %s47_s9 }
   0x8   :  { %s1094_s14 = smov 8   ;;  %s1095_s15 = smov [#allocation11]  }
   0x9   :  { %53 = dma.hbm_to_vmem [thread:$0]  %s46_s29, 6144, %s48_s9, [#allocation9], %s1093_s13, %s1093_s13, %s1094_s14  }
   0xa   :  { %s74_s16 = sshll.u32 %s1095_s15, 4  ;;  %s26_s18 = sshll.u32 %s1480_s0, 4  ;;  %s75_s16 = int_to_ptr.vmem [resolvable:$true] %s74_s16  ;;  %s27_s18 = int_to_ptr.hbm [resolvable:$true] %s26_s18 }
   0xb   :  { %77 = dma.hbm_to_vmem [thread:$0]  %s73_s12, 128, %s75_s16, [#allocation12]  }
   0xc   :  { %s35_s4 = sshll.u32 %s1481_s1, 4  ;;  %s1096_s21 = smov [#allocation2]   ;;  %s36_s4 = int_to_ptr.hbm [resolvable:$true] %s35_s4 }
   0xd   :  { %29 = dma.hbm_to_smem %s27_s18, 16, %s1096_s21, [#allocation5]  }
   0xe   :  { %s1097_s22 = smov [#allocation7]   ;;  %s58_s26 = sshll.u32 %s1483_s3, 4  ;;  %s59_s26 = int_to_ptr.hbm [resolvable:$true] %s58_s26 }
   0xf   :  { %s37_s23 = sshll.u32 %s1097_s22, 4  ;;  %s82_s28 = sshll.u32 %s1485_s5, 4  ;;  %s38_s23 = int_to_ptr.vmem [resolvable:$true] %s37_s23  ;;  %s83_s28 = int_to_ptr.hbm [resolvable:$true] %s82_s28 }
  0x10   :  { %40 = dma.hbm_to_vmem [thread:$0]  %s36_s4, 128, %s38_s23, [#allocation3]  }
  0x11   :  { %s1098_s29 = smov [#allocation10]   ;;  %s1099_s1 = smov [#allocation13]  }
  0x12   :  { %s60_s30 = sshll.u32 %s1098_s29, 4  ;;  %s84_s9 = sshll.u32 %s1099_s1, 4  ;;  %s61_s30 = int_to_ptr.vmem [resolvable:$true] %s60_s30  ;;  %s85_s9 = int_to_ptr.vmem [resolvable:$true] %s84_s9 }
  0x13   :  { %66 = dma.hbm_to_vmem [thread:$0]  %s59_s26, 6144, %s61_s30, [#allocation9], %s1093_s13, %s1093_s13, %s1094_s14  }
  0x14   :  { %s96_s3 = sshll.u32 %s1486_s6, 4  ;;  %s1100_s5 = smov [#allocation14]   ;;  %s97_s3 = int_to_ptr.hbm [resolvable:$true] %s96_s3 }
  0x15   :  { %90 = dma.hbm_to_vmem [thread:$0]  %s83_s28, 6144, %s85_s9, [#allocation12], %s1093_s13, %s1093_s13, %s1094_s14  }
  0x16   :  { %s98_s12 = sshll.u32 %s1100_s5, 4  ;;  %s99_s12 = int_to_ptr.vmem [resolvable:$true] %s98_s12 }
  0x17   :  { %101 = dma.hbm_to_vmem [thread:$0]  %s97_s3, 128, %s99_s12, [#allocation15]  }
  0x18   :  { %1078 = dma.done.wait [#allocation5], 16  }
  0x19   :  { %1079 = vsyncadd [#allocation5], 4294967280 }
  0x1a   :  { %1080 = dma.done.wait [#allocation3], 128  }
  0x1b   :  { %1081 = vsyncadd [#allocation3], 4294967168 }
  0x1c   :  { %1082 = dma.done.wait [#allocation9], 12288  }
  0x1d   :  { %1083 = vsyncadd [#allocation9], 4294955008 }
  0x1e   :  { %1084 = dma.done.wait [#allocation12], 6272  }
  0x1f   :  { %1085 = vsyncadd [#allocation12], 4294961024 }
  0x20   :  { %1086 = dma.done.wait [#allocation15], 128  }
  0x21   :  { %1087 = vsyncadd [#allocation15], 4294967168 }
  0x22   :  { %130 = sfence }
  0x23   :  { %v1178_v0 = vld [vmem:[#allocation10 + $0x18] sm:$0xff]  ;;  %v1181_v2 = vld [vmem:[#allocation10 + $0x10] sm:$0xff]  ;;  %v1184_v4 = vld [vmem:[#allocation10 + $0x8] sm:$0xff]  ;;  %s269_s6 = sld [smem:[#allocation2]]  ;;  %s748_s3 = sshll.u32 %s1488_s8, 4  ;;  %s749_s3 = int_to_ptr.hbm [resolvable:$true] %s748_s3 }
  0x24   :  { %v155_v1 = vand.u32 2147483647, %v1178_v0  ;;  %v154_v3 = vand.u32 2147483647, %v1181_v2  ;;  %v153_v6 = vand.u32 2147483647, %v1184_v4  ;;  %vm147_vm0 = vcmp.ne.f32.partialorder %v1178_v0, %v1178_v0 }
  0x25   :  { %v1187_v7 = vld [vmem:[#allocation10] sm:$0xff]  ;;  %v143_v21 = vmax.f32 %v1178_v0, 0.0  ;;  %v142_v25 = vmax.f32 %v1181_v2, 0.0  ;;  %v141_v26 = vmax.f32 %v1184_v4, 0.0  ;;  %vm146_vm1 = vcmp.ne.f32.partialorder %v1181_v2, %v1181_v2  ;;  %v1200_v34 = vld [vmem:[#allocation10 + $0x98] sm:$0xff]  ;;  %v1207_v40 = vld [vmem:[#allocation8 + $0x10] sm:$0xff] }
  0x26   :  { %v159_v5 = vsub.f32 0.0, %v155_v1  ;;  %v158_v8 = vsub.f32 0.0, %v154_v3  ;;  %v152_v9 = vand.u32 2147483647, %v1187_v7  ;;  %v157_v11 = vsub.f32 0.0, %v153_v6  ;;  %v135_v35 = vld [vmem:[#allocation8 + $0x18] sm:$0xff] }
  0x27   :  { %vm145_vm2 = vcmp.ne.f32.partialorder %v1184_v4, %v1184_v4  ;;  %v140_v41 = vmax.f32 %v1187_v7, 0.0  ;;  %v1217_v46 = vld [vmem:[#allocation8 + $0x8] sm:$0xff]  ;;  %v399_v47 = vand.u32 2147483647, %v1200_v34  ;;  %v1227_v53 = vld [vmem:[#allocation10 + $0x90] sm:$0xff]  ;;  %vm144_vm7 = vcmp.ne.f32.partialorder %v1187_v7, %v1187_v7  ;;  %s776_s13 = sld [smem:[#allocation2 + $0x4]] }
  0x28   :  { %v166_v10 = vmul.f32 1.442695, %v159_v5  ;;  %v164_v12 = vmul.f32 1.442695, %v158_v8  ;;  %v156_v13 = vsub.f32 0.0, %v152_v9  ;;  %v212_v44 = vld [vmem:[#allocation13] sm:$0xff]  ;;  %vm391_vm9 = vcmp.ne.f32.partialorder %v1200_v34, %v1200_v34 }
  0x29   :  { %v162_v14 = vmul.f32 1.442695, %v157_v11  ;;  %v1202_v36 = vstv %s269_s6  ;;  %v403_v58 = vsub.f32 0.0, %v399_v47  ;;  %v398_v63 = vand.u32 2147483647, %v1227_v53  ;;  %s769_s14 = sld [smem:[#allocation2 + $0x2]] }
  0x2a   :  { %814 = vpow2.f32 %v166_v10  ;;  %v160_v15 = vmul.f32 1.442695, %v156_v13  ;;  %v311_v39 = vsub.f32 %v135_v35, %v1202_v36  ;;  %v310_v45 = vsub.f32 %v1207_v40, %v1202_v36  ;;  %v215_v10 = vld [vmem:[#allocation13 + $0x18] sm:$0xff]  ;;  %s778_s15 = sld [smem:[#allocation2 + $0x6]]  ;;  %s1101_s6 = smov [#allocation17]  }
  0x2b   :  { %816 = vpow2.f32 %v164_v12  ;;  %v309_v51 = vsub.f32 %v1217_v46, %v1202_v36  ;;  %v410_v6 = vmul.f32 1.442695, %v403_v58  ;;  %v402_v13 = vsub.f32 0.0, %v398_v63  ;;  %v378_v63 = vld [vmem:[#allocation8 + $0x98] sm:$0xff]  ;;  %s1345_s16 = sld [smem:[#allocation2 + $0x1]] }
  0x2c   :  { %818 = vpow2.f32 %v162_v14  ;;  %v315_v60 = vmul.f32 %v311_v39, %v311_v39  ;;  %v314_v3 = vmul.f32 %v310_v45, %v310_v45  ;;  %vm390_vm11 = vcmp.ne.f32.partialorder %v1227_v53, %v1227_v53  ;;  %s1369_s17 = sld [smem:[#allocation2 + $0x5]] }
  0x2d   :  { %820 = vpow2.f32 %v160_v15  ;;  %v313_v12 = vmul.f32 %v309_v51, %v309_v51  ;;  %v214_v15 = vld [vmem:[#allocation13 + $0x10] sm:$0xff]  ;;  %s1426_s2 = sld [smem:[#allocation2 + $0x8]] }
  0x2e   :  { %s1435_s18 = sld [smem:[#allocation2 + $0xa]] }
  0x2f   :  { %s1438_s19 = sld [smem:[#allocation2 + $0x9]] }
  0x30   :  { %v815_v16 = vpop.eup %814  ;;  %s770_s4 = sld [smem:[#allocation2 + $0x3]] }
  0x31   :  { %v817_v17 = vpop.eup %816  ;;  %v195_v18 = vadd.f32 1.0, %v815_v16  ;;  %v198_v19 = vmul.f32 -0.5, %v815_v16  ;;  %v201_v29 = vand.u32 2147483647, %v815_v16  ;;  %s779_s25 = sld [smem:[#allocation2 + $0x7]] }
  0x32   :  { %v819_v20 = vpop.eup %818  ;;  %v186_v22 = vadd.f32 1.0, %v817_v17  ;;  %v189_v23 = vmul.f32 -0.5, %v817_v17  ;;  %v192_v32 = vand.u32 2147483647, %v817_v17  ;;  %s788_s27 = sld [smem:[#allocation2 + $0xb]] }
  0x33   :  { %v1191_v24 = vpop.eup %820  ;;  %822 = vlog2.f32 %v195_v18  ;;  %v177_v27 = vadd.f32 1.0, %v819_v20  ;;  %v199_v28 = vadd.f32 1.0, %v198_v19  ;;  %v180_v30 = vmul.f32 -0.5, %v819_v20 }
  0x34   :  { %824 = vlog2.f32 %v186_v22  ;;  %v190_v31 = vadd.f32 1.0, %v189_v23  ;;  %v168_v33 = vadd.f32 1.0, %v1191_v24  ;;  %v183_v38 = vand.u32 2147483647, %v819_v20 }
  0x35   :  { %826 = vlog2.f32 %v177_v27  ;;  %v181_v37 = vadd.f32 1.0, %v180_v30  ;;  %v171_v42 = vmul.f32 -0.5, %v1191_v24  ;;  %v200_v43 = vmul.f32 %v815_v16, %v199_v28  ;;  %v132_v27 = vld [vmem:[#allocation8] sm:$0xff] }
  0x36   :  { %828 = vlog2.f32 %v168_v33  ;;  %vm1211_vm3 = vcmp.lt.f32.partialorder %v201_v29, 0.0004427343  ;;  %v191_v49 = vmul.f32 %v817_v17, %v190_v31  ;;  %vm1220_vm4 = vcmp.lt.f32.partialorder %v192_v32, 0.0004427343  ;;  %v213_v29 = vld [vmem:[#allocation13 + $0x8] sm:$0xff] }
  0x37   :  { %v174_v52 = vand.u32 2147483647, %v1191_v24  ;;  %v182_v56 = vmul.f32 %v819_v20, %v181_v37  ;;  %vm1229_vm5 = vcmp.lt.f32.partialorder %v183_v38, 0.0004427343  ;;  %v172_v62 = vadd.f32 1.0, %v171_v42  ;;  %v1280_v38 = vld [vmem:[#allocation10 + $0x88] sm:$0xff] }
  0x38   :  { %830 = vpow2.f32 %v410_v6  ;;  %v408_v28 = vmul.f32 1.442695, %v402_v13  ;;  %v308_v30 = vsub.f32 %v132_v27, %v1202_v36  ;;  %v397_v50 = vand.u32 2147483647, %v1280_v38  ;;  %v460_v13 = vld [vmem:[#allocation13 + $0x98] sm:$0xff] }
  0x39   :  { %v823_v48 = vpop.eup %822  ;;  %vm1240_vm6 = vcmp.lt.f32.partialorder %v174_v52, 0.0004427343  ;;  %vm389_vm13 = vcmp.ne.f32.partialorder %v1280_v38, %v1280_v38 }
  0x3a   :  { %v825_v54 = vpop.eup %824  ;;  %v197_v55 = vmul.f32 0.6931472, %v823_v48  ;;  %832 = vpow2.f32 %v408_v28  ;;  %v312_v45 = vmul.f32 %v308_v30, %v308_v30  ;;  %v401_v52 = vsub.f32 0.0, %v397_v50  ;;  %v376_v50 = vld [vmem:[#allocation8 + $0x88] sm:$0xff] }
  0x3b   :  { %v827_v59 = vpop.eup %826  ;;  %v188_v61 = vmul.f32 0.6931472, %v825_v54 }
  0x3c   :  { %v203_v1 = vsel %vm1211_vm3, %v200_v43, %v197_v55  ;;  %v179_v5 = vmul.f32 0.6931472, %v827_v59  ;;  %v829_v8 = vpop.eup %828 }
  0x3d   :  { %v207_v9 = vadd.f32 %v203_v1, %v143_v21  ;;  %v194_v11 = vsel %vm1220_vm4, %v191_v49, %v188_v61  ;;  %v170_v20 = vmul.f32 0.6931472, %v829_v8  ;;  %v173_v21 = vmul.f32 %v1191_v24, %v172_v62 }
  0x3e   :  { %v206_v14 = vadd.f32 %v194_v11, %v142_v25  ;;  %v185_v16 = vsel %vm1229_vm5, %v182_v56, %v179_v5  ;;  %v1299_v1 = vstv %s776_s13  ;;  %vm361_vm4 = vcmask 1040384   ;;  %s1102_s13 = smov [#allocation16]  }
  0x3f   :  { %v1248_v18 = vsel %vm147_vm0, %v1178_v0, %v207_v9  ;;  %v205_v19 = vadd.f32 %v185_v16, %v141_v26  ;;  %v176_v37 = vsel %vm1240_vm6, %v173_v21, %v170_v20  ;;  %v543_v6 = vsub.f32 %v378_v63, %v1299_v1  ;;  %v131_v9 = vld [vmem:[#allocation7] sm:$0xff] }
  0x40   :  { %v219_v22 = vmul.f32 %v215_v10, %v1248_v18  ;;  %v306_v23 = vmul.f32 %v1248_v18, %v1248_v18  ;;  %v1258_v25 = vsel %vm146_vm1, %v1181_v2, %v206_v14  ;;  %v204_v42 = vadd.f32 %v176_v37, %v140_v41 }
  0x41   :  { %v218_v0 = vmul.f32 %v214_v15, %v1258_v25  ;;  %v305_v26 = vmul.f32 %v1258_v25, %v1258_v25  ;;  %v1267_v24 = vsel %vm145_vm2, %v1184_v4, %v205_v19  ;;  %v831_v4 = vpop.eup %830  ;;  %v386_v14 = vmax.f32 %v1227_v53, 0.0  ;;  %v377_v19 = vld [vmem:[#allocation8 + $0x90] sm:$0xff] }
  0x42   :  { %v223_v31 = vadd.f32 %v219_v22, %v135_v35  ;;  %v1270_v32 = vadd.f32 %v315_v60, %v306_v23  ;;  %v304_v33 = vmul.f32 %v1267_v24, %v1267_v24  ;;  %v217_v35 = vmul.f32 %v213_v29, %v1267_v24  ;;  %v833_v56 = vpop.eup %832 }
  0x43   :  { %v1272_v2 = vadd.f32 %v314_v3, %v305_v26  ;;  %v222_v39 = vadd.f32 %v218_v0, %v1207_v40  ;;  %v439_v47 = vadd.f32 1.0, %v831_v4  ;;  %v442_v48 = vmul.f32 -0.5, %v831_v4 }
  0x44   :  { %260 = vmatpush.xpose.msra.mxu0 %v223_v31  ;;  %v1286_v43 = vadd.f32 %v313_v12, %v304_v33  ;;  %v1289_v49 = vsel %vm144_vm7, %v1187_v7, %v204_v42  ;;  %v221_v51 = vadd.f32 %v217_v35, %v1217_v46  ;;  %v445_v57 = vand.u32 2147483647, %v831_v4  ;;  %v459_v33 = vld [vmem:[#allocation13 + $0x90] sm:$0xff] }
  0x45   :  { %v303_v40 = vmul.f32 %v1289_v49, %v1289_v49  ;;  %v216_v41 = vmul.f32 %v212_v44, %v1289_v49  ;;  %834 = vlog2.f32 %v439_v47  ;;  %v443_v55 = vadd.f32 1.0, %v442_v48 }
  0x46   :  { %v406_v7 = vmul.f32 1.442695, %v401_v52  ;;  %v430_v58 = vadd.f32 1.0, %v833_v56  ;;  %v433_v59 = vmul.f32 -0.5, %v833_v56  ;;  %v387_v46 = vmax.f32 %v1200_v34, 0.0 }
  0x47   :  { %v1296_v54 = vadd.f32 %v312_v45, %v303_v40  ;;  %v220_v60 = vadd.f32 %v216_v41, %v132_v27  ;;  %v444_v61 = vmul.f32 %v831_v4, %v443_v55  ;;  %vm446_vm8 = vcmp.lt.f32.partialorder %v445_v57, 0.0004427343  ;;  %v458_v55 = vld [vmem:[#allocation13 + $0x88] sm:$0xff] }
  0x48   :  { %261 = vmatpush.xpose.msra.mxu0 %v222_v39  ;;  %836 = vpow2.f32 %v406_v7  ;;  %v434_v3 = vadd.f32 1.0, %v433_v59  ;;  %v436_v8 = vand.u32 2147483647, %v833_v56  ;;  %v547_v17 = vmul.f32 %v543_v6, %v543_v6 }
  0x49   :  { %838 = vlog2.f32 %v430_v58  ;;  %v542_v27 = vsub.f32 %v377_v19, %v1299_v1  ;;  %v385_v40 = vmax.f32 %v1280_v38, 0.0  ;;  %v541_v41 = vsub.f32 %v376_v50, %v1299_v1 }
  0x4a   :  { %v435_v15 = vmul.f32 %v833_v56, %v434_v3  ;;  %vm437_vm10 = vcmp.lt.f32.partialorder %v436_v8, 0.0004427343  ;;  %v380_v3 = vld [vmem:[#allocation10 + $0x80] sm:$0xff] }
  0x4b   :  { %v835_v62 = vpop.eup %834  ;;  %v546_v37 = vmul.f32 %v542_v27, %v542_v27  ;;  %v545_v56 = vmul.f32 %v541_v41, %v541_v41  ;;  %vm388_vm0 = vcmp.ne.f32.partialorder %v380_v3, %v380_v3 }
  0x4c   :  { %262 = vmatpush.xpose.msra.mxu0 %v221_v51  ;;  %v441_v5 = vmul.f32 0.6931472, %v835_v62 }
  0x4e   :  { %v447_v10 = vsel %vm446_vm8, %v444_v61, %v441_v5  ;;  %v837_v11 = vpop.eup %836  ;;  %v1331_v61 = vld [vmem:[#allocation11 + $0x1] sm:$0x1]  ;;  %v396_v5 = vand.u32 2147483647, %v380_v3 }
  0x4f   :  { %v451_v12 = vadd.f32 %v447_v10, %v387_v46  ;;  %v839_v16 = vpop.eup %838  ;;  %v421_v20 = vadd.f32 1.0, %v837_v11  ;;  %v424_v21 = vmul.f32 -0.5, %v837_v11  ;;  %v427_v4 = vand.u32 2147483647, %v837_v11 }
  0x50   :  { %263 = vmatpush.xpose.msra.mxu0 %v220_v60  ;;  %v432_v23 = vmul.f32 0.6931472, %v839_v16  ;;  %v229_v62 = vand.u32 2147483647, %v1331_v61  ;;  %v400_v6 = vsub.f32 0.0, %v396_v5  ;;  %vm227_vm1 = vcmp.ne.f32.partialorder %v1331_v61, %v1331_v61 }
  0x51   :  { %v1306_v22 = vsel %vm391_vm9, %v1200_v34, %v451_v12  ;;  %840 = vlog2.f32 %v421_v20  ;;  %v425_v34 = vadd.f32 1.0, %v424_v21  ;;  %vm428_vm12 = vcmp.lt.f32.partialorder %v427_v4, 0.0004427343  ;;  %v457_v4 = vld [vmem:[#allocation13 + $0x80] sm:$0xff] }
  0x52   :  { %v464_v28 = vmul.f32 %v460_v13, %v1306_v22  ;;  %v538_v0 = vmul.f32 %v1306_v22, %v1306_v22  ;;  %v438_v26 = vsel %vm437_vm10, %v435_v15, %v432_v23  ;;  %v404_v8 = vmul.f32 1.442695, %v400_v6 }
  0x53   :  { %264 = vmatmul.f32.vlgmr.msra.gmra.mxu0 %v131_v9  ;;  %v450_v31 = vadd.f32 %v438_v26, %v386_v14  ;;  %v426_v44 = vmul.f32 %v837_v11, %v425_v34  ;;  %v384_v26 = vmax.f32 %v380_v3, 0.0 }
  0x54   :  { %v468_v29 = vadd.f32 %v464_v28, %v378_v63  ;;  %v1314_v30 = vadd.f32 %v547_v17, %v538_v0  ;;  %v230_v63 = vsub.f32 0.0, %v229_v62 }
  0x55   :  { %v1317_v39 = vsel %vm390_vm11, %v1227_v53, %v450_v31 }
  0x56   :  { %505 = vmatpush.xpose.msra.mxu1 %v468_v29  ;;  %v463_v35 = vmul.f32 %v459_v33, %v1317_v39  ;;  %v537_v42 = vmul.f32 %v1317_v39, %v1317_v39  ;;  %v231_v46 = vmul.f32 1.442695, %v230_v63  ;;  %v226_v29 = vmax.f32 %v1331_v61, 0.0 }
  0x57   :  { %v841_v45 = vpop.eup %840  ;;  %v298_v63 = vstv %s1345_s16 }
  0x58   :  { %v467_v47 = vadd.f32 %v463_v35, %v377_v19  ;;  %v1322_v48 = vadd.f32 %v546_v37, %v537_v42  ;;  %v423_v51 = vmul.f32 0.6931472, %v841_v45  ;;  %842 = vpow2.f32 %v231_v46 }
  0x59   :  { %844 = vpow2.f32 %v404_v8  ;;  %v1347_v42 = vstv %s769_s14  ;;  %v1352_v45 = vstv %s778_s15  ;;  %s737_s14 = sshll.u32 %s1102_s13, 4  ;;  %s738_s14 = int_to_ptr.vmem [resolvable:$true] %s737_s14 }
  0x5a   :  { %506 = vmatpush.xpose.msra.mxu1 %v467_v47  ;;  %v429_v53 = vsel %vm428_vm12, %v426_v44, %v423_v51  ;;  %v322_v51 = vmul.f32 %v1347_v42, %v1286_v43  ;;  %v321_v41 = vmul.f32 %v1347_v42, %v1296_v54  ;;  %v324_v46 = vmul.f32 %v1347_v42, %v1270_v32 }
  0x5b   :  { %v449_v52 = vadd.f32 %v429_v53, %v385_v40 }
  0x5d   :  { %v453_v57 = vsel %vm389_vm13, %v1280_v38, %v449_v52 }
  0x5e   :  { %v462_v7 = vmul.f32 %v458_v55, %v453_v57  ;;  %v536_v58 = vmul.f32 %v453_v57, %v453_v57  ;;  %v843_v9 = vpop.eup %842 }
  0x5f   :  { %v233_v38 = vadd.f32 1.0, %v843_v9  ;;  %v845_v10 = vpop.eup %844  ;;  %v236_v11 = vmul.f32 -0.5, %v843_v9  ;;  %v239_v15 = vand.u32 2147483647, %v843_v9 }
  0x60   :  { %v466_v59 = vadd.f32 %v462_v7, %v376_v50  ;;  %v1329_v60 = vadd.f32 %v545_v56, %v536_v58  ;;  %v412_v12 = vadd.f32 1.0, %v845_v10  ;;  %v415_v16 = vmul.f32 -0.5, %v845_v10 }
  0x61   :  { %846 = vlog2.f32 %v233_v38  ;;  %v237_v13 = vadd.f32 1.0, %v236_v11  ;;  %v418_v23 = vand.u32 2147483647, %v845_v10  ;;  %vm1334_vm14 = vcmp.lt.f32.partialorder %v239_v15, 0.0004427343 }
  0x62   :  { %507 = vmatpush.xpose.msra.mxu1 %v466_v59  ;;  %848 = vlog2.f32 %v412_v12  ;;  %v416_v17 = vadd.f32 1.0, %v415_v16  ;;  %v554_v55 = vmul.f32 %v1352_v45, %v1329_v60  ;;  %v278_v59 = vlaneseq }
  0x63   :  { %v238_v21 = vmul.f32 %v843_v9, %v237_v13  ;;  %850 = vlog2.f32 %v1267_v24  ;;  %vm419_vm15 = vcmp.lt.f32.partialorder %v418_v23, 0.0004427343 }
  0x64   :  { %v417_v0 = vmul.f32 %v845_v10, %v416_v17  ;;  %852 = vlog2.f32 %v1289_v49  ;;  %v1379_v6 = vand.u32 127, %v278_v59 }
  0x65   :  { %854 = vlog2.f32 %v1248_v18  ;;  %v375_v18 = vld [vmem:[#allocation8 + $0x80] sm:$0xff] }
  0x66   :  { %856 = vlog2.f32 %v1258_v25  ;;  %vm284_vm2 = vcmp.lt.s32.totalorder %v1379_v6, 16  ;;  %vm289_vm3 = vcmp.lt.s32.totalorder %v1379_v6, 32  ;;  %vm681_vm11 = vcmp.lt.s32.totalorder %v1379_v6, 8 }
  0x67   :  { %v847_v14 = vpop.eup %846  ;;  %858 = vlog2.f32 %v453_v57  ;;  %v540_v57 = vsub.f32 %v375_v18, %v1299_v1 }
  0x68   :  { %v849_v19 = vpop.eup %848  ;;  %v235_v20 = vmul.f32 0.6931472, %v847_v14  ;;  %860 = vlog2.f32 %v1317_v39  ;;  %v1359_v39 = vld [vmem:[#allocation11] sm:$0x1] }
  0x69   :  { %v414_v28 = vmul.f32 0.6931472, %v849_v19  ;;  %v851_v49 = vpop.eup %850  ;;  %862 = vlog2.f32 %v1306_v22  ;;  %v337_v22 = vsub.f32 %v1359_v39, %v1202_v36  ;;  %v544_v62 = vmul.f32 %v540_v57, %v540_v57  ;;  %v244_v57 = vld [vmem:[#allocation14] sm:$0x1] }
  0x6a   :  { %v241_v33 = vsel %vm1334_vm14, %v238_v21, %v235_v20  ;;  %v853_v44 = vpop.eup %852  ;;  %v293_v40 = vmul.f32 0.6931472, %v851_v49  ;;  %v323_v36 = vmul.f32 %v1347_v42, %v1272_v2 }
  0x6b   :  { %v420_v31 = vsel %vm419_vm15, %v417_v0, %v414_v28  ;;  %v242_v24 = vadd.f32 %v241_v33, %v226_v29  ;;  %v855_v47 = vpop.eup %854  ;;  %v291_v52 = vmul.f32 0.6931472, %v853_v44  ;;  %v338_v58 = vmul.f32 %v337_v22, %v337_v22 }
  0x6c   :  { %v448_v34 = vadd.f32 %v420_v31, %v384_v26  ;;  %v857_v50 = vpop.eup %856  ;;  %v297_v60 = vmul.f32 0.6931472, %v855_v47  ;;  %v300_v9 = vsub.f32 %v298_v63, %v293_v40  ;;  %v1384_v28 = vstv %s1369_s17  ;;  %s739_s17 = sshll.u32 %s1487_s7, 4  ;;  %s740_s17 = int_to_ptr.hbm [resolvable:$true] %s739_s17 }
  0x6d   :  { %v1362_v53 = vsel %vm227_vm1, %v1331_v61, %v242_v24  ;;  %v859_v43 = vpop.eup %858  ;;  %v295_v61 = vmul.f32 0.6931472, %v857_v50  ;;  %v299_v8 = vsub.f32 %v298_v63, %v291_v52  ;;  %v556_v44 = vmul.f32 %v1352_v45, %v1314_v30 }
  0x6e   :  { %v452_v37 = vsel %vm388_vm0, %v380_v3, %v448_v34  ;;  %864 = vlog2.f32 %v1362_v53  ;;  %v336_v54 = vmul.f32 %v1362_v53, %v1362_v53  ;;  %v861_v7 = vpop.eup %860  ;;  %v525_v5 = vmul.f32 0.6931472, %v859_v43 }
  0x6f   :  { %v461_v35 = vmul.f32 %v457_v4, %v452_v37  ;;  %866 = vlog2.f32 %v452_v37  ;;  %v535_v56 = vmul.f32 %v452_v37, %v452_v37  ;;  %v863_v3 = vpop.eup %862  ;;  %v301_v10 = vsub.f32 %v298_v63, %v295_v61 }
  0x70   :  { %v302_v11 = vsub.f32 %v298_v63, %v297_v60  ;;  %v527_v12 = vmul.f32 0.6931472, %v861_v7  ;;  %v339_v14 = vadd.f32 %v338_v58, %v336_v54  ;;  %v325_v15 = vadd.f32 %v321_v41, %v299_v8 }
  0x71   :  { %v465_v25 = vadd.f32 %v461_v35, %v375_v18  ;;  %v548_v38 = vadd.f32 %v544_v62, %v535_v56  ;;  %v326_v2 = vadd.f32 %v322_v51, %v300_v9  ;;  %v327_v17 = vadd.f32 %v323_v36, %v301_v10  ;;  %v1404_v56 = vld [vmem:[#allocation10 + $0x100] sm:$0xff] }
  0x72   :  { %v328_v19 = vadd.f32 %v324_v46, %v302_v11  ;;  %v529_v20 = vmul.f32 0.6931472, %v863_v3  ;;  %v771_v23 = vadd.f32 -0.5, %v325_v15  ;;  %v532_v29 = vsub.f32 %v1384_v28, %v525_v5  ;;  %v1416_v46 = vld [vmem:[#allocation11 + $0x3] sm:$0x1] }
  0x73   :  { %508 = vmatpush.xpose.msra.mxu1 %v465_v25  ;;  %v553_v32 = vmul.f32 %v1352_v45, %v548_v38  ;;  %v772_v27 = vadd.f32 -0.5, %v326_v2  ;;  %v773_v0 = vadd.f32 -0.5, %v327_v17  ;;  %v533_v31 = vsub.f32 %v1384_v28, %v527_v12 }
  0x74   :  { %v865_v13 = vpop.eup %864  ;;  %v774_v26 = vadd.f32 -0.5, %v328_v19  ;;  %v343_v33 = vsel %vm284_vm2, %v771_v23, 0.0  ;;  %v534_v4 = vsub.f32 %v1384_v28, %v529_v20  ;;  %v555_v18 = vmul.f32 %v1352_v45, %v1322_v48 }
  0x75   :  { %v867_v16 = vpop.eup %866  ;;  %v344_v34 = vsel %vm284_vm2, %v772_v27, 0.0  ;;  %v345_v24 = vsel %vm284_vm2, %v773_v0, 0.0  ;;  %v558_v47 = vadd.f32 %v554_v55, %v532_v29  ;;  %v334_v50 = vmul.f32 0.6931472, %v865_v13 }
  0x76   :  { %v523_v21 = vmul.f32 0.6931472, %v867_v16  ;;  %v346_v35 = vsel %vm284_vm2, %v774_v26, 0.0  ;;  %v347_v49 = vadd.f32 %v344_v34, %v343_v33  ;;  %v559_v51 = vadd.f32 %v555_v18, %v533_v31 }
  0x77   :  { %v340_v41 = vmul.f32 %v339_v14, %v1347_v42  ;;  %v560_v52 = vadd.f32 %v556_v44, %v534_v4  ;;  %v781_v43 = vadd.f32 -0.5, %v558_v47  ;;  %v335_v54 = vsub.f32 %v298_v63, %v334_v50  ;;  %v1423_v14 = vld [vmem:[#allocation11 + $0x5] sm:$0x1] }
  0x78   :  { %v531_v37 = vsub.f32 %v1384_v28, %v523_v21  ;;  %v348_v40 = vadd.f32 %v347_v49, %v345_v24  ;;  %v782_v7 = vadd.f32 -0.5, %v559_v51  ;;  %v612_v60 = vand.u32 2147483647, %v1404_v56 }
  0x79   :  { %v783_v58 = vadd.f32 -0.5, %v560_v52  ;;  %v576_v55 = vsel %vm289_vm3, %v781_v43, 0.0  ;;  %v341_v59 = vadd.f32 %v340_v41, %v335_v54  ;;  %v245_v62 = vmul.f32 %v244_v57, %v1362_v53 }
  0x7a   :  { %v557_v25 = vadd.f32 %v553_v32, %v531_v37  ;;  %v349_v48 = vadd.f32 %v348_v40, %v346_v35  ;;  %v577_v42 = vsel %vm289_vm3, %v782_v7, 0.0  ;;  %v613_v5 = vsub.f32 0.0, %v612_v60  ;;  %v1428_v37 = vld [vmem:[#allocation8 + $0x100] sm:$0xff] }
  0x7b   :  { %v578_v63 = vsel %vm289_vm3, %v783_v58, 0.0  ;;  %v775_v36 = vadd.f32 -0.5, %v341_v59  ;;  %v474_v8 = vand.u32 2147483647, %v1416_v46  ;;  %v246_v12 = vadd.f32 %v245_v62, %v1359_v39  ;;  %v469_v40 = vld [vmem:[#allocation11 + $0x2] sm:$0x1] }
  0x7c   :  { %v780_v22 = vadd.f32 -0.5, %v557_v25  ;;  %350 = vadd.xlane.f32.xlu0 %v349_v48  ;;  %v614_v10 = vmul.f32 1.442695, %v613_v5  ;;  %v636_v15 = vand.u32 2147483647, %v1423_v14  ;;  %v687_v24 = vstv %s1426_s2 }
  0x7d   :  { %v360_v9 = vsel %vm289_vm3, %v775_v36, 0.0  ;;  %v475_v11 = vsub.f32 0.0, %v474_v8  ;;  %v247_v2 = vperm.slane %v246_v12, 0  ;;  %v609_v18 = vmax.f32 %v1404_v56, 0.0  ;;  %v1447_v59 = vld [vmem:[#allocation11 + $0x4] sm:$0x1] }
  0x7e   :  { %v575_v30 = vsel %vm289_vm3, %v780_v22, 0.0  ;;  %v362_v53 = vsel %vm361_vm4, %v360_v9, 0.0  ;;  %868 = vpow2.f32 %v614_v10  ;;  %v637_v16 = vsub.f32 0.0, %v636_v15  ;;  %v489_v62 = vld [vmem:[#allocation14 + $0x1] sm:$0x1] }
  0x7f   :  { %v579_v61 = vadd.f32 %v576_v55, %v575_v30  ;;  %v476_v13 = vmul.f32 1.442695, %v475_v11  ;;  %vm610_vm6 = vcmp.ne.f32.partialorder %v1404_v56, %v1404_v56  ;;  %v688_v50 = vsub.f32 %v1428_v37, %v687_v24 }
  0x80   :  { %v638_v19 = vmul.f32 1.442695, %v637_v16  ;;  %v471_v22 = vmax.f32 %v1416_v46, 0.0  ;;  %v569_v7 = vsub.f32 %v469_v40, %v1299_v1  ;;  %vm472_vm8 = vcmp.ne.f32.partialorder %v1416_v46, %v1416_v46 }
  0x81   :  { %v580_v3 = vadd.f32 %v579_v61, %v577_v42  ;;  %870 = vpow2.f32 %v476_v13  ;;  %v689_v30 = vmul.f32 %v688_v50, %v688_v50  ;;  %v633_v1 = vmax.f32 %v1423_v14, 0.0 }
  0x82   :  { %872 = vpow2.f32 %v638_v19  ;;  %v570_v36 = vmul.f32 %v569_v7, %v569_v7  ;;  %v699_v5 = vsub.f32 %v1447_v59, %v687_v24  ;;  %v691_v10 = vstv %s1435_s18 }
  0x83   :  { %v581_v38 = vadd.f32 %v580_v3, %v578_v63  ;;  %vm634_vm10 = vcmp.ne.f32.partialorder %v1423_v14, %v1423_v14  ;;  %v684_v15 = vstv %s1438_s19 }
  0x84   :  { %363 = vadd.xlane.f32.xlu0 %v362_v53  ;;  %v869_v32 = vpop.eup %868 }
  0x85   :  { %582 = vadd.xlane.f32.xlu1 %v581_v38  ;;  %v616_v39 = vadd.f32 1.0, %v869_v32  ;;  %v619_v21 = vmul.f32 -0.5, %v869_v32  ;;  %v622_v31 = vand.u32 2147483647, %v869_v32 }
  0x87   :  { %v871_v23 = vpop.eup %870  ;;  %874 = vlog2.f32 %v616_v39  ;;  %v620_v0 = vadd.f32 1.0, %v619_v21  ;;  %vm623_vm5 = vcmp.lt.f32.partialorder %v622_v31, 0.0004427343 }
  0x88   :  { %v478_v26 = vadd.f32 1.0, %v871_v23  ;;  %v481_v29 = vmul.f32 -0.5, %v871_v23  ;;  %v873_v34 = vpop.eup %872  ;;  %v484_v35 = vand.u32 2147483647, %v871_v23 }
  0x89   :  { %v621_v4 = vmul.f32 %v869_v32, %v620_v0  ;;  %v640_v44 = vadd.f32 1.0, %v873_v34  ;;  %v643_v25 = vmul.f32 -0.5, %v873_v34  ;;  %v646_v48 = vand.u32 2147483647, %v873_v34 }
  0x8a   :  { %876 = vlog2.f32 %v478_v26  ;;  %v482_v33 = vadd.f32 1.0, %v481_v29  ;;  %vm485_vm7 = vcmp.lt.f32.partialorder %v484_v35, 0.0004427343 }
  0x8b   :  { %878 = vlog2.f32 %v640_v44  ;;  %v644_v43 = vadd.f32 1.0, %v643_v25  ;;  %vm647_vm9 = vcmp.lt.f32.partialorder %v646_v48, 0.0004427343 }
  0x8c   :  { %v483_v51 = vmul.f32 %v871_v23, %v482_v33 }
  0x8d   :  { %v875_v49 = vpop.eup %874  ;;  %v645_v60 = vmul.f32 %v873_v34, %v644_v43 }
  0x8e   :  { %v618_v47 = vmul.f32 0.6931472, %v875_v49 }
  0x90   :  { %v877_v41 = vpop.eup %876  ;;  %v624_v52 = vsel %vm623_vm5, %v621_v4, %v618_v47  ;;  %v628_v47 = vld [vmem:[#allocation13 + $0x100] sm:$0xff] }
  0x91   :  { %v625_v54 = vadd.f32 %v624_v52, %v609_v18  ;;  %v480_v57 = vmul.f32 0.6931472, %v877_v41  ;;  %v879_v63 = vpop.eup %878 }
  0x92   :  { %v642_v3 = vmul.f32 0.6931472, %v879_v63 }
  0x93   :  { %v626_v58 = vsel %vm610_vm6, %v1404_v56, %v625_v54  ;;  %v486_v55 = vsel %vm485_vm7, %v483_v51, %v480_v57 }
  0x94   :  { %880 = vlog2.f32 %v626_v58  ;;  %v686_v42 = vmul.f32 %v626_v58, %v626_v58  ;;  %v487_v61 = vadd.f32 %v486_v55, %v471_v22  ;;  %v648_v11 = vsel %vm647_vm9, %v645_v60, %v642_v3 }
  0x95   :  { %v649_v12 = vadd.f32 %v648_v11, %v633_v1  ;;  %v629_v50 = vmul.f32 %v628_v47, %v626_v58 }
  0x96   :  { %v488_v56 = vsel %vm472_vm8, %v1416_v46, %v487_v61  ;;  %v690_v8 = vadd.f32 %v689_v30, %v686_v42 }
  0x97   :  { %882 = vlog2.f32 %v488_v56  ;;  %v568_v9 = vmul.f32 %v488_v56, %v488_v56  ;;  %v490_v38 = vmul.f32 %v489_v62, %v488_v56  ;;  %v1457_v32 = vsel %vm634_vm10, %v1423_v14, %v649_v12 }
  0x98   :  { %v692_v46 = vmul.f32 %v691_v10, %v690_v8  ;;  %884 = vlog2.f32 %v1457_v32  ;;  %v698_v19 = vmul.f32 %v1457_v32, %v1457_v32 }
  0x99   :  { %v491_v53 = vadd.f32 %v490_v38, %v469_v40  ;;  %v630_v40 = vadd.f32 %v629_v50, %v1428_v37 }
  0x9a   :  { %v881_v13 = vpop.eup %880 }
  0x9b   :  { %v683_v16 = vmul.f32 0.6931472, %v881_v13  ;;  %670 = vmatpush.xpose.msra.mxu2 %v630_v40  ;;  %v492_v30 = vperm.slane %v491_v53, 0 }
  0x9d   :  { %v685_v39 = vsub.f32 %v684_v15, %v683_v16 }
  0xd0   :  { %v265_v17 = vpop.f32.mrf.mxu0 }
  0xd1   :  { %v266_v20 = vadd.f32 %v265_v17, %v247_v2  ;;  %v571_v2 = vadd.f32 %v570_v36, %v568_v9  ;;  %v700_v17 = vmul.f32 %v699_v5, %v699_v5 }
  0xd3   :  { %v268_v27 = vmax.f32 %v266_v20, 0.0  ;;  %v883_v20 = vpop.eup %882  ;;  %v572_v23 = vmul.f32 %v571_v2, %v1352_v45  ;;  %v701_v0 = vadd.f32 %v700_v17, %v698_v19 }
  0xd4   :  { %v566_v21 = vmul.f32 0.6931472, %v883_v20  ;;  %v885_v31 = vpop.eup %884 }
  0xd5   :  { %509 = vmatmul.f32.vlgmr.msra.gmra.mxu1 %v268_v27  ;;  %v693_v27 = vadd.f32 %v692_v46, %v685_v39  ;;  %v696_v34 = vmul.f32 0.6931472, %v885_v31  ;;  %v702_v4 = vmul.f32 %v701_v0, %v691_v10  ;;  %v651_v31 = vld [vmem:[#allocation14 + $0x2] sm:$0x1] }
  0xd6   :  { %v567_v26 = vsub.f32 %v1384_v28, %v566_v21 }
  0xd7   :  { %v789_v29 = vadd.f32 -0.5, %v693_v27  ;;  %v697_v35 = vsub.f32 %v684_v15, %v696_v34 }
  0xd8   :  { %v573_v33 = vadd.f32 %v572_v23, %v567_v26 }
  0xd9   :  { %v705_v14 = vsel %vm289_vm3, %v789_v29, 0.0  ;;  %v703_v18 = vadd.f32 %v702_v4, %v697_v35 }
  0xda   :  { %706 = vadd.xlane.f32.xlu2 %v705_v14  ;;  %v784_v24 = vadd.f32 -0.5, %v573_v33  ;;  %v652_v33 = vmul.f32 %v651_v31, %v1457_v32 }
  0xdb   :  { %v790_v28 = vadd.f32 -0.5, %v703_v18 }
  0xdc   :  { %v592_v49 = vsel %vm289_vm3, %v784_v24, 0.0  ;;  %v653_v14 = vadd.f32 %v652_v33, %v1447_v59 }
  0xdd   :  { %v593_v45 = vsel %vm361_vm4, %v592_v49, 0.0  ;;  %v716_v44 = vsel %vm681_vm11, %v790_v28, 0.0 }
  0xde   :  { %594 = vadd.xlane.f32.xlu1 %v593_v45  ;;  %v717_v25 = vsel %vm361_vm4, %v716_v44, 0.0  ;;  %v654_v34 = vperm.slane %v653_v14, 0 }
  0xe2   :  { %718 = vadd.xlane.f32.xlu2 %v717_v25 }
  0xef   :  { %v351_v51 = vpop.xlane.xlu0 %350 }
  0xf0   :  { %v352_v43 = vrot.slane %v351_v51, 4 }
  0xf2   :  { %v353_v48 = vadd.f32 %v352_v43, %v351_v51 }
  0xf4   :  { %v354_v55 = vrot.slane %v353_v48, 2 }
  0xf6   :  { %v355_v58 = vadd.f32 %v354_v55, %v353_v48 }
  0xf7   :  { %v364_v41 = vpop.xlane.xlu0 %363 }
  0xf8   :  { %v365_v52 = vrot.slane %v364_v41, 4  ;;  %v583_v22 = vpop.xlane.xlu1 %582  ;;  %v356_v56 = vrot.slane %v355_v58, 1 }
  0xf9   :  { %v584_v54 = vrot.slane %v583_v22, 4 }
  0xfa   :  { %v366_v57 = vadd.f32 %v365_v52, %v364_v41  ;;  %v357_v5 = vadd.f32 %v356_v56, %v355_v58 }
  0xfb   :  { %v585_v7 = vadd.f32 %v584_v54, %v583_v22 }
  0xfc   :  { %v367_v6 = vrot.slane %v366_v57, 2  ;;  %791 = vpush %v357_v5 }
  0xfd   :  { %v586_v42 = vrot.slane %v585_v7, 2 }
  0xfe   :  { %v368_v61 = vadd.f32 %v367_v6, %v366_v57 }
  0xff   :  { %v587_v37 = vadd.f32 %v586_v42, %v585_v7 }
 0x100   :  { %v369_v63 = vrot.slane %v368_v61, 1 }
 0x101   :  { %v588_v36 = vrot.slane %v587_v37, 1 }
 0x102   :  { %v370_v3 = vadd.f32 %v369_v63, %v368_v61 }
 0x103   :  { %v589_v8 = vadd.f32 %v588_v36, %v587_v37 }
 0x104   :  { %793 = vpush %v370_v3 }
 0x105   :  { %795 = vpush %v589_v8 }
 0x12d   :  { %s792_s20 = spop %791 }
 0x135   :  { %s794_s21 = spop %793 }
 0x136   :  { %s372_s22 = sadd.f32 %s794_s21, %s792_s20  ;;  %s796_s24 = spop %795 }
 0x138   :  { %s373_s23 = sadd.f32 %s770_s4, %s372_s22 }
 0x13a   :  { %s591_s26 = sadd.f32 %s796_s24, %s373_s23 }
 0x14d   :  { %v707_v9 = vpop.xlane.xlu2 %706 }
 0x14e   :  { %v708_v38 = vrot.slane %v707_v9, 4 }
 0x150   :  { %v709_v10 = vadd.f32 %v708_v38, %v707_v9 }
 0x151   :  { %v595_v11 = vpop.xlane.xlu1 %594 }
 0x152   :  { %v510_v60 = vpop.f32.mrf.mxu1  ;;  %v710_v12 = vrot.slane %v709_v10, 2  ;;  %v596_v53 = vrot.slane %v595_v11, 4 }
 0x153   :  { %v511_v62 = vadd.f32 %v510_v60, %v492_v30 }
 0x154   :  { %v597_v13 = vadd.f32 %v596_v53, %v595_v11  ;;  %v711_v15 = vadd.f32 %v710_v12, %v709_v10 }
 0x155   :  { %v513_v1 = vmax.f32 %v511_v62, 0.0  ;;  %v719_v16 = vpop.xlane.xlu2 %718 }
 0x156   :  { %v598_v2 = vrot.slane %v597_v13, 2  ;;  %v720_v46 = vrot.slane %v719_v16, 4  ;;  %v712_v17 = vrot.slane %v711_v15, 1 }
 0x157   :  { %671 = vmatmul.f32.vlgmr.msra.gmra.mxu2 %v513_v1 }
 0x158   :  { %v599_v19 = vadd.f32 %v598_v2, %v597_v13  ;;  %v721_v20 = vadd.f32 %v720_v46, %v719_v16  ;;  %v713_v23 = vadd.f32 %v712_v17, %v711_v15 }
 0x15a   :  { %v600_v39 = vrot.slane %v599_v19, 1  ;;  %v722_v21 = vrot.slane %v721_v20, 2 }
 0x15c   :  { %v601_v27 = vadd.f32 %v600_v39, %v599_v19  ;;  %v723_v0 = vadd.f32 %v722_v21, %v721_v20 }
 0x15e   :  { %797 = vpush %v601_v27  ;;  %v724_v26 = vrot.slane %v723_v0, 1 }
 0x15f   :  { %799 = vpush %v713_v23 }
 0x160   :  { %v725_v29 = vadd.f32 %v724_v26, %v723_v0 }
 0x162   :  { %801 = vpush %v725_v29 }
 0x18f   :  { %s798_s0 = spop %797 }
 0x190   :  { %s603_s28 = sadd.f32 %s798_s0, %s591_s26  ;;  %s800_s29 = spop %799 }
 0x192   :  { %s604_s30 = sadd.f32 %s779_s25, %s603_s28 }
 0x193   :  { %s802_s9 = spop %801 }
 0x194   :  { %s715_s1 = sadd.f32 %s800_s29, %s604_s30 }
 0x196   :  { %s727_s5 = sadd.f32 %s802_s9, %s715_s1 }
 0x198   :  { %s728_s12 = sadd.f32 %s788_s27, %s727_s5 }
 0x19a   :  { %731 = sst [smem:[#allocation17]] %s728_s12 }
 0x19b   :  { %751 = dma.smem_to_hbm %s1101_s6, 16, %s749_s3, [#allocation6]  }
 0x1da   :  { %v672_v4 = vpop.f32.mrf.mxu2 }
 0x1db   :  { %v673_v24 = vadd.f32 %v672_v4, %v654_v34 }
 0x1dd   :  { %729 = vst [vmem:[#allocation16] sm:$0xff] %v673_v24 }
 0x1de   :  { %742 = dma.vmem_to_hbm [thread:$0]  %s738_s14, 128, %s740_s17, [#allocation4]  }
 0x1df   :  { %1088 = dma.done.wait [#allocation4], 128  }
 0x1e0   :  { %1089 = vsyncadd [#allocation4], 4294967168 }
 0x1e1   :  { %1090 = dma.done.wait [#allocation6], 16  }
 0x1e2   :  { %1091 = vsyncadd [#allocation6], 4294967280 }
 0x1e3   :  { %760 = sfence }
 0x1e4   :  { %761 = vsyncpa [#allocation3], 1 }
 0x1e5   :  { %762 = vsyncpa [#allocation9], 1 }
 0x1e6   :  { %763 = vsyncpa [#allocation12], 1 }
 0x1e7   :  { %764 = vsyncpa [#allocation15], 1 }
 0x1e8   :  { %765 = vsyncpa [#allocation4], 1 }
 0x1e9   :  { %766 = vsyncpa [#allocation5], 1 }
 0x1ea   :  { %767 = vsyncpa [#allocation6], 1 }

</bundles_post_ra>
